<compile_context>
chip_gen: v5e
topology: v5e:2x2
jax: 0.10.0
libtpu: 0.0.40
codegen_flags: <defaults>
</compile_context>

<pallas_src>
import math

import jax
import jax.numpy as jnp
from jax.experimental import pallas as pl
from jax.experimental.pallas import tpu as pltpu


def _round_up(v, m):
    return ((v + m - 1) // m) * m


def _resident_spec(block_shape, index_map):
    """BlockSpec for an operand whose block index never changes.

    Single-buffered (pl.Buffered(1)) when supported: it is fetched exactly
    once, so the default second buffer is pure VMEM waste.
    """
    try:
        return pl.BlockSpec(block_shape, index_map, pipeline_mode=pl.Buffered(1))
    except TypeError:  # older JAX without pipeline_mode on BlockSpec
        return pl.BlockSpec(block_shape, index_map)


def _vmem_budget_bytes():
    """Device VMEM capacity with ~30% headroom (v5e/v6e: 128 MiB, v7x: 64 MiB)."""
    cap = 64 * 1024 * 1024  # conservative fallback (v7x per-TC size)
    try:
        cap = int(getattr(pltpu.get_tpu_info(), "vmem_capacity_bytes", cap))
    except Exception:
        pass
    return int(cap * 0.7)


def prepare_gate_params(weight, bias):
    """One-time parameter prep for gate_net_forward. Call at init and cache.

    weight: (out_features, in_features)   nn.Linear layout
    bias:   (out_features,)
    Returns (w_t, bias2d, out_features):
      w_t:    (in_features, out_cols)  K-first layout -> kernel does x @ w_t
              with no transpose anywhere (HBM or per grid step).
      bias2d: (1, out_cols)
    out_cols == out_features unless padding to a 128-lane multiple costs
    <=25% extra columns; tiny gates (e.g. 32->16) are NOT padded, since the
    padding would multiply output HBM bytes just to avoid a masked store.
    """
    out_f, in_f = weight.shape
    assert bias.shape == (out_f,)
    out_128 = _round_up(out_f, 128)
    pad = out_128 - out_f
    use_pad = pad > 0 and 4 * pad <= out_f  # <=25% extra lanes
    out_cols = out_128 if use_pad else out_f

    w_t = weight.T  # (in_f, out_f)
    if use_pad:
        w_t = jnp.pad(w_t, ((0, 0), (0, pad)))
        bias = jnp.pad(bias, (0, pad))
    return w_t, bias.reshape(1, out_cols), out_f


def _linear_kernel(x_ref, wt_ref, b_ref, o_ref):
    # x: (tm, in_f) @ w_t: (in_f, out_cols) on the MXU, f32 accumulation.
    acc = jnp.dot(x_ref[...], wt_ref[...], preferred_element_type=jnp.float32)
    # Bias broadcasts over the sublane (row) axis; epilogue stays in f32.
    o_ref[...] = (acc + b_ref[...]).astype(o_ref.dtype)


def gate_net_forward(x, w_t, bias2d, out_f, *, block_rows=1024):
    """Equivalent of PyTorch F.linear(x, weight, bias), using prepared params.

    x: (B, in_features) float32  ->  (B, out_features) float32
    w_t / bias2d / out_f come from prepare_gate_params (cached, not per-call).
    """
    B, in_f = x.shape
    in_f_w, out_cols = w_t.shape
    assert in_f == in_f_w and bias2d.shape == (1, out_cols)

    # ---- Row tile: as large as fits (multiple of 8 sublanes), but keep at
    # least two grid steps when there is enough work so v7x's two TensorCores
    # can both take "parallel" steps (no effect on single-TC v5e/v6e). ----
    B8 = _round_up(B, 8)
    tm = min(block_rows, B8)
    if B8 >= 16:
        tm = min(tm, _round_up((B8 + 1) // 2, 8))
    tm = max(8, _round_up(tm, 8))

    # ---- Shrink tm until the working set fits the device VMEM budget. ----
    budget = _vmem_budget_bytes()
    itm = jnp.dtype(x.dtype).itemsize

    def working_set(tm_):
        # double-buffered x/out tiles + resident (single-buffered) weight/bias
        return itm * (2 * tm_ * (in_f + out_cols) + in_f * out_cols + out_cols)

    while tm > 8 and working_set(tm) > budget:
        tm = max(8, _round_up(tm // 2, 8))
    # TODO(synk): if the resident weight alone ever exceeds ~1/3 of the budget
    # (huge gates), add an out-column grid axis instead of keeping it resident.

    B_pad = _round_up(B, tm)
    if B_pad != B:
        x = jnp.pad(x, ((0, B_pad - B), (0, 0)))
    grid = (B_pad // tm,)

    vmem_limit = int(min(budget, max(2 * working_set(tm), 16 * 1024 * 1024)))

    cost = pl.CostEstimate(
        flops=2 * B_pad * in_f * out_cols,
        transcendentals=0,
        bytes_accessed=itm * (B_pad * in_f + in_f * out_cols + out_cols
                              + B_pad * out_cols),
    )

    out = pl.pallas_call(
        _linear_kernel,
        out_shape=jax.ShapeDtypeStruct((B_pad, out_cols), x.dtype),
        grid=grid,
        in_specs=[
            pl.BlockSpec((tm, in_f), lambda i: (i, 0)),          # x rows, pipelined
            _resident_spec((in_f, out_cols), lambda i: (0, 0)),  # weight, resident
            _resident_spec((1, out_cols), lambda i: (0, 0)),     # bias, resident
        ],
        out_specs=pl.BlockSpec((tm, out_cols), lambda i: (i, 0)),
        compiler_params=pltpu.CompilerParams(
            dimension_semantics=("parallel",),  # independent rows
            vmem_limit_bytes=vmem_limit,
        ),
        cost_estimate=cost,
    )(x, w_t, bias2d)

    if B_pad != B or out_cols != out_f:
        out = out[:B, :out_f]
    return out


if __name__ == "__main__":
    # Shapes consistent with Gate_net(input_shape, output_shape).
    batch = 8
    input_shape = 32
    output_shape = 16

    key = jax.random.PRNGKey(0)
    kx, kw, kb, kx2 = jax.random.split(key, 4)

    x = jax.random.normal(kx, (batch, input_shape), dtype=jnp.float32)

    # Deterministic parameter init (mimics nn.Linear's uniform fan-in scaling).
    bound = 1.0 / math.sqrt(input_shape)
    weight = jax.random.uniform(kw, (output_shape, input_shape), jnp.float32,
                                minval=-bound, maxval=bound)
    bias = jax.random.uniform(kb, (output_shape,), jnp.float32,
                              minval=-bound, maxval=bound)

    # One-time parameter prep (cached; NOT re-executed per forward call).
    w_t, b2, out_f = prepare_gate_params(weight, bias)
    w_t, b2 = jax.block_until_ready((w_t, b2))

    out = jax.block_until_ready(gate_net_forward(x, w_t, b2, out_f))
    ref = x @ weight.T + bias
    assert out.shape == (batch, output_shape)
    assert jnp.allclose(out, ref, atol=1e-5, rtol=1e-5)

    # Second check: batch not a multiple of the tile -> padding path and a
    # grid with >=2 steps (megacore-shardable on v7x).
    x2 = jax.random.normal(kx2, (200, input_shape), dtype=jnp.float32)
    out2 = jax.block_until_ready(gate_net_forward(x2, w_t, b2, out_f))
    ref2 = x2 @ weight.T + bias
    assert out2.shape == (200, output_shape)
    assert jnp.allclose(out2, ref2, atol=1e-5, rtol=1e-5)

    print("KERNEL_OK")
</pallas_src>

<mosaic_0001>
module attributes {stable_mosaic.version = 11 : i64} {
  func.func @_linear_kernel(%arg0: i32, %arg1: memref<8x32xf32, #tpu.memory_space<vmem>>, %arg2: memref<32x16xf32, #tpu.memory_space<vmem>>, %arg3: memref<1x16xf32, #tpu.memory_space<vmem>>, %arg4: memref<8x16xf32, #tpu.memory_space<vmem>>) attributes {dimension_semantics = [#tpu.dimension_semantics<parallel>], iteration_bounds = array<i64: 1>, scalar_prefetch = 0 : i64, scratch_operands = 0 : i64, tpu.core_type = #tpu.core_type<tc>, window_params = [{transform_indices = @transform_0, window_bounds = array<i64: 8, 32>}, {pipeline_mode = #tpu.pipeline_mode<synchronous>, transform_indices = @transform_1, window_bounds = array<i64: 32, 16>}, {pipeline_mode = #tpu.pipeline_mode<synchronous>, transform_indices = @transform_2, window_bounds = array<i64: 1, 16>}, {transform_indices = @transform_3, window_bounds = array<i64: 8, 16>}]} {
    %c0 = arith.constant 0 : index
    %c0_0 = arith.constant 0 : index
    %0 = vector.load %arg1[%c0, %c0_0] : memref<8x32xf32, #tpu.memory_space<vmem>>, vector<8x32xf32>
    %c0_1 = arith.constant 0 : index
    %c0_2 = arith.constant 0 : index
    %1 = vector.load %arg2[%c0_1, %c0_2] : memref<32x16xf32, #tpu.memory_space<vmem>>, vector<32x16xf32>
    %cst = arith.constant dense<0.000000e+00> : vector<8x16xf32>
    %2 = tpu.matmul %0, %1, %cst {dimension_numbers = #tpu.dot_dimension_numbers<[1], [0], [0], [1], [0, 0, 1, 1], [], []>} : vector<8x32xf32>, vector<32x16xf32>, vector<8x16xf32> -> vector<8x16xf32>
    %c0_3 = arith.constant 0 : index
    %c0_4 = arith.constant 0 : index
    %3 = vector.load %arg3[%c0_3, %c0_4] : memref<1x16xf32, #tpu.memory_space<vmem>>, vector<1x16xf32>
    %4 = vector.broadcast %3 : vector<1x16xf32> to vector<8x16xf32>
    %5 = arith.addf %2, %4 : vector<8x16xf32>
    %c0_5 = arith.constant 0 : index
    %c0_6 = arith.constant 0 : index
    %6 = vector.load %arg4[%c0_5, %c0_6] : memref<8x16xf32, #tpu.memory_space<vmem>>, vector<8x16xf32>
    tpu.vector_store %arg4[%c0_5, %c0_6], %5 {strides = array<i32>} : memref<8x16xf32, #tpu.memory_space<vmem>>, vector<8x16xf32>,
    return
  }
  func.func @transform_0(%arg0: i32) -> (i32, i32) {
    %c0_i32 = arith.constant 0 : i32
    %c0_i32_0 = arith.constant 0 : i32
    return %arg0, %c0_i32 : i32, i32
  }
  func.func @transform_1(%arg0: i32) -> (i32, i32) {
    %c0_i32 = arith.constant 0 : i32
    %c0_i32_0 = arith.constant 0 : i32
    %c0_i32_1 = arith.constant 0 : i32
    return %c0_i32, %c0_i32_0 : i32, i32
  }
  func.func @transform_2(%arg0: i32) -> (i32, i32) {
    %c0_i32 = arith.constant 0 : i32
    %c0_i32_0 = arith.constant 0 : i32
    %c0_i32_1 = arith.constant 0 : i32
    return %c0_i32, %c0_i32_0 : i32, i32
  }
  func.func @transform_3(%arg0: i32) -> (i32, i32) {
    %c0_i32 = arith.constant 0 : i32
    %c0_i32_0 = arith.constant 0 : i32
    return %arg0, %c0_i32 : i32, i32
  }
}

</mosaic_0001>

<bundles_post_ra>
// kernel: tpu_custom_call.1
= control target key start
LH: loop header
LB: loop body
LE: loop exit
PB: predicated region body
PF: predicated region fallthrough
CT: control target
= control target key end

     0   :  { %s137_s0 = inlined_call_operand.vmem [shape: f32[8,32], index: 0, kind: input, shape index: {}]   ;;  %s138_s1 = inlined_call_operand.vmem [shape: f32[32,16], index: 1, kind: input, shape index: {}]   ;;  %s139_s2 = inlined_call_operand.vmem [shape: f32[1,16], index: 2, kind: input, shape index: {}]   ;;  %s140_s3 = inlined_call_operand.hbm [shape: f32[8,16], index: 3, kind: output, shape index: {}]  }
   0x1   :  { %v19_v0 = vld [vmem:[%s138_s1 + $0x18] sm:$0xff]  ;;  %v18_v1 = vld [vmem:[%s138_s1 + $0x10] sm:$0xff]  ;;  %v17_v2 = vld [vmem:[%s138_s1 + $0x8] sm:$0xff] }
   0x2   :  { %40 = vmatpush.msra.mxu0 %v19_v0 }
   0x3   :  { %8 = vsyncpa [#allocation3], 0  ;;  %v16_v3 = vld [vmem:[%s138_s1] sm:$0xff]  ;;  %vm24_vm0 = vcmask 261120   ;;  %s95_s24 = smov [#allocation2]   ;;  %s57_s28 = sshll.u32 %s140_s3, 4  ;;  %s58_s28 = int_to_ptr.hbm [resolvable:$true] %s57_s28 }
   0x4   :  { %41 = vmatpush.msra.mxu0 %v18_v1  ;;  %v15_v4 = vld [vmem:[%s137_s0] sm:$0xff]  ;;  %s55_s25 = sshll.u32 %s95_s24, 4  ;;  %vm48_vm1 = vcmask 130048   ;;  %s56_s25 = int_to_ptr.vmem [resolvable:$true] %s55_s25 }
   0x5   :  { %v68_v5 = vld [vmem:[%s139_s2] ss:$0 sm:$0xff] }
   0x6   :  { %42 = vmatpush.msra.mxu0 %v17_v2 }
   0x8   :  { %43 = vmatpush.msra.mxu0 %v16_v3 }
   0x9   :  { %66 = vmatmul.msk.f32.vlgmr.msra.gmra.mxu0 %vm24_vm0, %v15_v4 }
  0x86   :  { %v45_v6 = vpop.f32.mrf.mxu0 }
  0x87   :  { %v46_v7 = vadd.f32 %v68_v5, %v45_v6 }
  0x89   :  { %49 = vst.msk [vmem:[#allocation2] sm:$0xff] %vm48_vm1, %v46_v7 }
  0x8a   :  { %60 = dma.vmem_to_hbm [thread:$0]  %s56_s25, 128, %s58_s28, [#allocation3]  }
  0x8b   :  { %93 = dma.done.wait [#allocation3], 128  }
  0x8c   :  { %94 = vsyncadd [#allocation3], 4294967168 }
  0x8d   :  { %65 = vsyncpa [#allocation3], 1 }

</bundles_post_ra>
